<compile_context>
chip_gen: v7x
topology: tpu7x:2x2x1
jax: 0.10.0
libtpu: 0.0.40
codegen_flags: <defaults>
</compile_context>

<pallas_src>
import jax
import jax.numpy as jnp
from jax import lax
from jax.experimental import pallas as pl
from jax.experimental.pallas import tpu as pltpu


def _round_up(x, m):
    return ((x + m - 1) // m) * m


def hypernym_kernel(idx_ref, w_ref, emb_ref, out_ref):
    idx = idx_ref[...]                    # (tb, H) int32 hypernym ids
    w = w_ref[...]                        # (tb, H) float32 weights
    tb, H = idx.shape
    Vp = emb_ref.shape[0]

    # lane_ids[b, v] = v  (vocab id along lanes; already the MXU-LHS layout of S)
    lane_ids = lax.broadcasted_iota(jnp.int32, (tb, Vp), 1)            # (tb, Vp)

    # 2-D scatter accumulation; H is small & static so the loop is fully unrolled
    # at trace time and each iteration only keeps a (tb, 1) broadcast live.
    s = jnp.zeros((tb, Vp), jnp.float32)
    for h in range(H):
        hit = idx[:, h][:, None] == lane_ids                           # (tb, Vp) bool
        s = s + jnp.where(hit, w[:, h][:, None], 0.0)                  # weight folded in

    # Weighted sum of embeddings via a single MXU matmul: (tb, Vp) @ (Vp, Dp).
    out_ref[...] = jnp.dot(s, emb_ref[...], preferred_element_type=jnp.float32)


def pad_embedding_table(emb_table):
    """Pad the (V, D) table to (round8(V), round128(D)) with zeros.

    Call ONCE (at parameter-init time) and reuse; padded rows/cols are zero and
    never reachable by valid indices, so they contribute nothing.
    """
    V, D = emb_table.shape
    Vp = _round_up(V, 8)
    Dp = _round_up(D, 128)
    return jnp.pad(emb_table.astype(jnp.float32), ((0, Vp - V), (0, Dp - D)))


def hypernym_forward(idx, weights, emb_table_padded, emb_dim):
    """idx, weights: (B, H); emb_table_padded: (Vp, Dp) from pad_embedding_table.

    Returns (B, emb_dim) float32, matching the PyTorch module's output.
    """
    B, H = idx.shape
    Vp, Dp = emb_table_padded.shape

    # --- batch tiling -----------------------------------------------------------
    Bp8 = _round_up(max(B, 1), 8)
    if Bp8 >= 16:
        # Split the batch tile so v7x's two TensorCores both get work.
        tb = min(128, _round_up(pl.cdiv(Bp8, 2), 8))
    else:
        tb = Bp8
    Bp = _round_up(Bp8, tb)
    grid = (Bp // tb,)

    # --- per-call padding of the tiny index/weight arrays only -------------------
    pad_b = Bp - B
    idx_p = jnp.pad(idx.astype(jnp.int32), ((0, pad_b), (0, 0)))
    w_p = jnp.pad(weights.astype(jnp.float32), ((0, pad_b), (0, 0)))  # pad rows: w=0

    # --- VMEM budget: double-buffered tiles + resident table + headroom ----------
    table_bytes = Vp * Dp * 4
    tile_bytes = tb * Dp * 4 + 2 * tb * H * 4
    vmem_limit = int(min(128 << 20, 2 * (table_bytes + tile_bytes) + (8 << 20)))

    cost = pl.CostEstimate(
        flops=2 * Bp * Vp * Dp,                       # the MXU matmul
        transcendentals=0,
        bytes_accessed=(Vp * Dp + Bp * Dp + 2 * Bp * H) * 4,
    )

    out_p = pl.pallas_call(
        hypernym_kernel,
        out_shape=jax.ShapeDtypeStruct((Bp, Dp), jnp.float32),
        grid=grid,
        in_specs=[
            pl.BlockSpec((tb, H), lambda i: (i, 0)),     # idx tile
            pl.BlockSpec((tb, H), lambda i: (i, 0)),     # weight tile
            pl.BlockSpec((Vp, Dp), lambda i: (0, 0)),    # table resident across steps
        ],
        out_specs=pl.BlockSpec((tb, Dp), lambda i: (i, 0)),   # lane-dense (Dp % 128 == 0)
        compiler_params=pltpu.CompilerParams(
            dimension_semantics=("parallel",),
            vmem_limit_bytes=vmem_limit,
        ),
        cost_estimate=cost,
    )(idx_p, w_p, emb_table_padded)

    # Strip padding (rows beyond B, columns beyond emb_dim=300).  If the consumer
    # can work with the padded (Bp, Dp) slab, return out_p instead and fuse there.
    return out_p[:B, :emb_dim]


if __name__ == "__main__":
    key = jax.random.PRNGKey(0)
    k_emb, k_idx, k_w = jax.random.split(key, 3)

    B = 8        # batch of hypernym lists
    H = 8        # hypernyms per example
    V = 64       # vocab size of the embedding layer
    D = 300      # emb_dim (torch.zeros(300) in the module)

    emb_table = jax.random.normal(k_emb, (V, D), dtype=jnp.float32)
    idx = jax.random.randint(k_idx, (B, H), 0, V, dtype=jnp.int32)
    weights = jax.random.uniform(k_w, (B, H), dtype=jnp.float32)

    # One-time table padding (would live next to the embedding parameters).
    emb_table_padded = pad_embedding_table(emb_table)

    out = hypernym_forward(idx, weights, emb_table_padded, D)
    out = jax.block_until_ready(out)

    # Pure-JAX reference of the PyTorch loop.
    ref = jnp.sum(weights[:, :, None] * emb_table[idx], axis=1)
    assert out.shape == (B, D)
    assert jnp.allclose(out, ref, atol=1e-4, rtol=1e-4)

    print("KERNEL_OK")
</pallas_src>

<mosaic_0001>
module attributes {stable_mosaic.version = 11 : i64} {
  func.func @hypernym_kernel(%arg0: i32, %arg1: memref<8x8xi32, #tpu.memory_space<vmem>>, %arg2: memref<8x8xf32, #tpu.memory_space<vmem>>, %arg3: memref<64x384xf32, #tpu.memory_space<vmem>>, %arg4: memref<8x384xf32, #tpu.memory_space<vmem>>) attributes {dimension_semantics = [#tpu.dimension_semantics<parallel>], iteration_bounds = array<i64: 1>, scalar_prefetch = 0 : i64, scratch_operands = 0 : i64, tpu.core_type = #tpu.core_type<tc>, window_params = [{transform_indices = @transform_0, window_bounds = array<i64: 8, 8>}, {transform_indices = @transform_1, window_bounds = array<i64: 8, 8>}, {pipeline_mode = #tpu.pipeline_mode<synchronous>, transform_indices = @transform_2, window_bounds = array<i64: 64, 384>}, {transform_indices = @transform_3, window_bounds = array<i64: 8, 384>}]} {
    %c0 = arith.constant 0 : index
    %c0_0 = arith.constant 0 : index
    %0 = vector.load %arg1[%c0, %c0_0] : memref<8x8xi32, #tpu.memory_space<vmem>>, vector<8x8xi32>
    %c0_1 = arith.constant 0 : index
    %c0_2 = arith.constant 0 : index
    %1 = vector.load %arg2[%c0_1, %c0_2] : memref<8x8xf32, #tpu.memory_space<vmem>>, vector<8x8xf32>
    %2 = tpu.iota {dimensions = array<i32: 1>} : vector<8x64xi32>
    %cst = arith.constant 0.000000e+00 : f32
    %3 = vector.broadcast %cst : f32 to vector<8x64xf32>
    %4 = vector.extract_strided_slice %0 {offsets = [0, 0], sizes = [8, 1], strides = [1, 1]} : vector<8x8xi32> to vector<8x1xi32>
    %5 = vector.shape_cast %4 : vector<8x1xi32> to vector<8xi32>
    %6 = vector.shape_cast %5 : vector<8xi32> to vector<8x1xi32>
    %7 = vector.broadcast %6 : vector<8x1xi32> to vector<8x64xi32>
    %8 = arith.cmpi eq, %7, %2 : vector<8x64xi32>
    %9 = vector.extract_strided_slice %1 {offsets = [0, 0], sizes = [8, 1], strides = [1, 1]} : vector<8x8xf32> to vector<8x1xf32>
    %10 = vector.shape_cast %9 : vector<8x1xf32> to vector<8xf32>
    %11 = vector.shape_cast %10 : vector<8xf32> to vector<8x1xf32>
    %cst_3 = arith.constant 0.000000e+00 : f32
    %12 = vector.shape_cast %11 : vector<8x1xf32> to vector<8x1xf32>
    %13 = vector.broadcast %12 : vector<8x1xf32> to vector<8x64xf32>
    %14 = vector.broadcast %cst_3 : f32 to vector<8x64xf32>
    %15 = arith.select %8, %13, %14 : vector<8x64xi1>, vector<8x64xf32>
    %16 = arith.addf %3, %15 : vector<8x64xf32>
    %17 = vector.extract_strided_slice %0 {offsets = [0, 1], sizes = [8, 1], strides = [1, 1]} : vector<8x8xi32> to vector<8x1xi32>
    %18 = vector.shape_cast %17 : vector<8x1xi32> to vector<8xi32>
    %19 = vector.shape_cast %18 : vector<8xi32> to vector<8x1xi32>
    %20 = vector.broadcast %19 : vector<8x1xi32> to vector<8x64xi32>
    %21 = arith.cmpi eq, %20, %2 : vector<8x64xi32>
    %22 = vector.extract_strided_slice %1 {offsets = [0, 1], sizes = [8, 1], strides = [1, 1]} : vector<8x8xf32> to vector<8x1xf32>
    %23 = vector.shape_cast %22 : vector<8x1xf32> to vector<8xf32>
    %24 = vector.shape_cast %23 : vector<8xf32> to vector<8x1xf32>
    %cst_4 = arith.constant 0.000000e+00 : f32
    %25 = vector.shape_cast %24 : vector<8x1xf32> to vector<8x1xf32>
    %26 = vector.broadcast %25 : vector<8x1xf32> to vector<8x64xf32>
    %27 = vector.broadcast %cst_4 : f32 to vector<8x64xf32>
    %28 = arith.select %21, %26, %27 : vector<8x64xi1>, vector<8x64xf32>
    %29 = arith.addf %16, %28 : vector<8x64xf32>
    %30 = vector.extract_strided_slice %0 {offsets = [0, 2], sizes = [8, 1], strides = [1, 1]} : vector<8x8xi32> to vector<8x1xi32>
    %31 = vector.shape_cast %30 : vector<8x1xi32> to vector<8xi32>
    %32 = vector.shape_cast %31 : vector<8xi32> to vector<8x1xi32>
    %33 = vector.broadcast %32 : vector<8x1xi32> to vector<8x64xi32>
    %34 = arith.cmpi eq, %33, %2 : vector<8x64xi32>
    %35 = vector.extract_strided_slice %1 {offsets = [0, 2], sizes = [8, 1], strides = [1, 1]} : vector<8x8xf32> to vector<8x1xf32>
    %36 = vector.shape_cast %35 : vector<8x1xf32> to vector<8xf32>
    %37 = vector.shape_cast %36 : vector<8xf32> to vector<8x1xf32>
    %cst_5 = arith.constant 0.000000e+00 : f32
    %38 = vector.shape_cast %37 : vector<8x1xf32> to vector<8x1xf32>
    %39 = vector.broadcast %38 : vector<8x1xf32> to vector<8x64xf32>
    %40 = vector.broadcast %cst_5 : f32 to vector<8x64xf32>
    %41 = arith.select %34, %39, %40 : vector<8x64xi1>, vector<8x64xf32>
    %42 = arith.addf %29, %41 : vector<8x64xf32>
    %43 = vector.extract_strided_slice %0 {offsets = [0, 3], sizes = [8, 1], strides = [1, 1]} : vector<8x8xi32> to vector<8x1xi32>
    %44 = vector.shape_cast %43 : vector<8x1xi32> to vector<8xi32>
    %45 = vector.shape_cast %44 : vector<8xi32> to vector<8x1xi32>
    %46 = vector.broadcast %45 : vector<8x1xi32> to vector<8x64xi32>
    %47 = arith.cmpi eq, %46, %2 : vector<8x64xi32>
    %48 = vector.extract_strided_slice %1 {offsets = [0, 3], sizes = [8, 1], strides = [1, 1]} : vector<8x8xf32> to vector<8x1xf32>
    %49 = vector.shape_cast %48 : vector<8x1xf32> to vector<8xf32>
    %50 = vector.shape_cast %49 : vector<8xf32> to vector<8x1xf32>
    %cst_6 = arith.constant 0.000000e+00 : f32
    %51 = vector.shape_cast %50 : vector<8x1xf32> to vector<8x1xf32>
    %52 = vector.broadcast %51 : vector<8x1xf32> to vector<8x64xf32>
    %53 = vector.broadcast %cst_6 : f32 to vector<8x64xf32>
    %54 = arith.select %47, %52, %53 : vector<8x64xi1>, vector<8x64xf32>
    %55 = arith.addf %42, %54 : vector<8x64xf32>
    %56 = vector.extract_strided_slice %0 {offsets = [0, 4], sizes = [8, 1], strides = [1, 1]} : vector<8x8xi32> to vector<8x1xi32>
    %57 = vector.shape_cast %56 : vector<8x1xi32> to vector<8xi32>
    %58 = vector.shape_cast %57 : vector<8xi32> to vector<8x1xi32>
    %59 = vector.broadcast %58 : vector<8x1xi32> to vector<8x64xi32>
    %60 = arith.cmpi eq, %59, %2 : vector<8x64xi32>
    %61 = vector.extract_strided_slice %1 {offsets = [0, 4], sizes = [8, 1], strides = [1, 1]} : vector<8x8xf32> to vector<8x1xf32>
    %62 = vector.shape_cast %61 : vector<8x1xf32> to vector<8xf32>
    %63 = vector.shape_cast %62 : vector<8xf32> to vector<8x1xf32>
    %cst_7 = arith.constant 0.000000e+00 : f32
    %64 = vector.shape_cast %63 : vector<8x1xf32> to vector<8x1xf32>
    %65 = vector.broadcast %64 : vector<8x1xf32> to vector<8x64xf32>
    %66 = vector.broadcast %cst_7 : f32 to vector<8x64xf32>
    %67 = arith.select %60, %65, %66 : vector<8x64xi1>, vector<8x64xf32>
    %68 = arith.addf %55, %67 : vector<8x64xf32>
    %69 = vector.extract_strided_slice %0 {offsets = [0, 5], sizes = [8, 1], strides = [1, 1]} : vector<8x8xi32> to vector<8x1xi32>
    %70 = vector.shape_cast %69 : vector<8x1xi32> to vector<8xi32>
    %71 = vector.shape_cast %70 : vector<8xi32> to vector<8x1xi32>
    %72 = vector.broadcast %71 : vector<8x1xi32> to vector<8x64xi32>
    %73 = arith.cmpi eq, %72, %2 : vector<8x64xi32>
    %74 = vector.extract_strided_slice %1 {offsets = [0, 5], sizes = [8, 1], strides = [1, 1]} : vector<8x8xf32> to vector<8x1xf32>
    %75 = vector.shape_cast %74 : vector<8x1xf32> to vector<8xf32>
    %76 = vector.shape_cast %75 : vector<8xf32> to vector<8x1xf32>
    %cst_8 = arith.constant 0.000000e+00 : f32
    %77 = vector.shape_cast %76 : vector<8x1xf32> to vector<8x1xf32>
    %78 = vector.broadcast %77 : vector<8x1xf32> to vector<8x64xf32>
    %79 = vector.broadcast %cst_8 : f32 to vector<8x64xf32>
    %80 = arith.select %73, %78, %79 : vector<8x64xi1>, vector<8x64xf32>
    %81 = arith.addf %68, %80 : vector<8x64xf32>
    %82 = vector.extract_strided_slice %0 {offsets = [0, 6], sizes = [8, 1], strides = [1, 1]} : vector<8x8xi32> to vector<8x1xi32>
    %83 = vector.shape_cast %82 : vector<8x1xi32> to vector<8xi32>
    %84 = vector.shape_cast %83 : vector<8xi32> to vector<8x1xi32>
    %85 = vector.broadcast %84 : vector<8x1xi32> to vector<8x64xi32>
    %86 = arith.cmpi eq, %85, %2 : vector<8x64xi32>
    %87 = vector.extract_strided_slice %1 {offsets = [0, 6], sizes = [8, 1], strides = [1, 1]} : vector<8x8xf32> to vector<8x1xf32>
    %88 = vector.shape_cast %87 : vector<8x1xf32> to vector<8xf32>
    %89 = vector.shape_cast %88 : vector<8xf32> to vector<8x1xf32>
    %cst_9 = arith.constant 0.000000e+00 : f32
    %90 = vector.shape_cast %89 : vector<8x1xf32> to vector<8x1xf32>
    %91 = vector.broadcast %90 : vector<8x1xf32> to vector<8x64xf32>
    %92 = vector.broadcast %cst_9 : f32 to vector<8x64xf32>
    %93 = arith.select %86, %91, %92 : vector<8x64xi1>, vector<8x64xf32>
    %94 = arith.addf %81, %93 : vector<8x64xf32>
    %95 = vector.extract_strided_slice %0 {offsets = [0, 7], sizes = [8, 1], strides = [1, 1]} : vector<8x8xi32> to vector<8x1xi32>
    %96 = vector.shape_cast %95 : vector<8x1xi32> to vector<8xi32>
    %97 = vector.shape_cast %96 : vector<8xi32> to vector<8x1xi32>
    %98 = vector.broadcast %97 : vector<8x1xi32> to vector<8x64xi32>
    %99 = arith.cmpi eq, %98, %2 : vector<8x64xi32>
    %100 = vector.extract_strided_slice %1 {offsets = [0, 7], sizes = [8, 1], strides = [1, 1]} : vector<8x8xf32> to vector<8x1xf32>
    %101 = vector.shape_cast %100 : vector<8x1xf32> to vector<8xf32>
    %102 = vector.shape_cast %101 : vector<8xf32> to vector<8x1xf32>
    %cst_10 = arith.constant 0.000000e+00 : f32
    %103 = vector.shape_cast %102 : vector<8x1xf32> to vector<8x1xf32>
    %104 = vector.broadcast %103 : vector<8x1xf32> to vector<8x64xf32>
    %105 = vector.broadcast %cst_10 : f32 to vector<8x64xf32>
    %106 = arith.select %99, %104, %105 : vector<8x64xi1>, vector<8x64xf32>
    %107 = arith.addf %94, %106 : vector<8x64xf32>
    %c0_11 = arith.constant 0 : index
    %c0_12 = arith.constant 0 : index
    %108 = vector.load %arg3[%c0_11, %c0_12] : memref<64x384xf32, #tpu.memory_space<vmem>>, vector<64x384xf32>
    %cst_13 = arith.constant dense<0.000000e+00> : vector<8x384xf32>
    %109 = tpu.matmul %107, %108, %cst_13 {dimension_numbers = #tpu.dot_dimension_numbers<[1], [0], [0], [1], [0, 0, 1, 1], [], []>} : vector<8x64xf32>, vector<64x384xf32>, vector<8x384xf32> -> vector<8x384xf32>
    %c0_14 = arith.constant 0 : index
    %c0_15 = arith.constant 0 : index
    %110 = vector.load %arg4[%c0_14, %c0_15] : memref<8x384xf32, #tpu.memory_space<vmem>>, vector<8x384xf32>
    tpu.vector_store %arg4[%c0_14, %c0_15], %109 {strides = array<i32>} : memref<8x384xf32, #tpu.memory_space<vmem>>, vector<8x384xf32>,
    return
  }
  func.func @transform_0(%arg0: i32) -> (i32, i32) {
    %c0_i32 = arith.constant 0 : i32
    %c0_i32_0 = arith.constant 0 : i32
    return %arg0, %c0_i32 : i32, i32
  }
  func.func @transform_1(%arg0: i32) -> (i32, i32) {
    %c0_i32 = arith.constant 0 : i32
    %c0_i32_0 = arith.constant 0 : i32
    return %arg0, %c0_i32 : i32, i32
  }
  func.func @transform_2(%arg0: i32) -> (i32, i32) {
    %c0_i32 = arith.constant 0 : i32
    %c0_i32_0 = arith.constant 0 : i32
    %c0_i32_1 = arith.constant 0 : i32
    return %c0_i32, %c0_i32_0 : i32, i32
  }
  func.func @transform_3(%arg0: i32) -> (i32, i32) {
    %c0_i32 = arith.constant 0 : i32
    %c0_i32_0 = arith.constant 0 : i32
    return %arg0, %c0_i32 : i32, i32
  }
}

</mosaic_0001>

<bundles_post_ra>
// kernel: tpu_custom_call.1
= control target key start
LH: loop header
LB: loop body
LE: loop exit
PB: predicated region body
PF: predicated region fallthrough
CT: control target
= control target key end

     0   :  { %8 = vsyncpa [#allocation3], 0  ;;  %s603_s0 = inlined_call_operand.hbm [shape: s32[8,8], index: 0, kind: input, shape index: {}]   ;;  %s604_s1 = inlined_call_operand.hbm [shape: f32[8,8], index: 1, kind: input, shape index: {}]   ;;  %s605_s2 = inlined_call_operand.hbm [shape: f32[64,384], index: 2, kind: input, shape index: {}]   ;;  %s606_s3 = inlined_call_operand.hbm [shape: f32[8,384], index: 3, kind: output, shape index: {}]  }
   0x1   :  { %9 = vsyncpa [#allocation6], 0 }
   0x2   :  { %10 = vsyncpa [#allocation4], 0  ;;  %s508_s12 = smov [#allocation5]   ;;  %s509_s14 = smov [#allocation2]  }
   0x3   :  { %s27_s13 = sshll.u32 %s508_s12, 4  ;;  %s17_s15 = sshll.u32 %s509_s14, 4  ;;  %s28_s13 = int_to_ptr.vmem [resolvable:$true] %s27_s13  ;;  %s18_s15 = int_to_ptr.vmem [resolvable:$true] %s17_s15 }
   0x4   :  { %s414_s18 = scalar_lea.hbm %s604_s1, 128 }
   0x5   :  { %p415_p0 = scmp.ne.s32.totalorder %s604_s1, %s414_s18  ;;  %p418_p1 = scmp.lt.u32.totalorder %s414_s18, %s604_s1 }
   0x7   :  { %p420_p2 = pnand %p418_p1, %p415_p0 }
   0x9   :  { %423 = shalt.err (!%p420_p2)
}
   0xa   :  { %s424_s23 = scalar_lea.vmem %s28_s13, 128  ;;  %p429_p4 = scmp.lt.s32.totalorder %s28_s13, %s28_s13 }
   0xb   :  { %p425_p3 = scmp.ne.s32.totalorder %s28_s13, %s424_s23  ;;  %p430_p5 = scmp.lt.s32.totalorder %s424_s23, %s424_s23 }
   0xd   :  { %p431_p6 = por %p430_p5, %p429_p4 }
   0xf   :  { %p432_p7 = pnand %p431_p6, %p425_p3 }
  0x11   :  { %435 = shalt.err (!%p432_p7)
}
  0x12   :  { %30 = dma.hbm_to_vmem [thread:$0]  %s604_s1, 128, %s28_s13, [#allocation6]  }
  0x13   :  { %s436_s28 = scalar_lea.hbm %s603_s0, 128 }
  0x14   :  { %p437_p8 = scmp.ne.s32.totalorder %s603_s0, %s436_s28  ;;  %p440_p9 = scmp.lt.u32.totalorder %s436_s28, %s603_s0 }
  0x16   :  { %p442_p10 = pnand %p440_p9, %p437_p8 }
  0x18   :  { %445 = shalt.err (!%p442_p10)
}
  0x19   :  { %s446_s6 = scalar_lea.vmem %s18_s15, 128  ;;  %p451_p12 = scmp.lt.s32.totalorder %s18_s15, %s18_s15 }
  0x1a   :  { %p447_p11 = scmp.ne.s32.totalorder %s18_s15, %s446_s6  ;;  %p452_p13 = scmp.lt.s32.totalorder %s446_s6, %s446_s6 }
  0x1c   :  { %p453_p0 = por %p452_p13, %p451_p12 }
  0x1e   :  { %p454_p1 = pnand %p453_p0, %p447_p11 }
  0x20   :  { %457 = shalt.err (!%p454_p1)
}
  0x21   :  { %20 = dma.hbm_to_vmem [thread:$0]  %s603_s0, 128, %s18_s15, [#allocation3]  }
  0x22   :  { %s510_s8 = smov [#allocation7]   ;;  %s458_s12 = scalar_lea.hbm %s605_s2, 3072 }
  0x23   :  { %s36_s9 = sshll.u32 %s510_s8, 4  ;;  %p459_p2 = scmp.ne.s32.totalorder %s605_s2, %s458_s12  ;;  %s37_s9 = int_to_ptr.vmem [resolvable:$true] %s36_s9 }
  0x24   :  { %p462_p3 = scmp.lt.u32.totalorder %s458_s12, %s605_s2 }
  0x26   :  { %p464_p4 = pnand %p462_p3, %p459_p2 }
  0x28   :  { %467 = shalt.err (!%p464_p4)
}
  0x29   :  { %s468_s18 = scalar_lea.vmem %s37_s9, 3072  ;;  %p473_p6 = scmp.lt.s32.totalorder %s37_s9, %s37_s9 }
  0x2a   :  { %p469_p5 = scmp.ne.s32.totalorder %s37_s9, %s468_s18  ;;  %p474_p7 = scmp.lt.s32.totalorder %s468_s18, %s468_s18 }
  0x2c   :  { %p475_p8 = por %p474_p7, %p473_p6 }
  0x2e   :  { %p476_p9 = pnand %p475_p8, %p469_p5 }
  0x30   :  { %479 = shalt.err (!%p476_p9)
}
  0x31   :  { %s511_s0 = smov 384   ;;  %s512_s15 = smov 24  }
  0x32   :  { %42 = dma.hbm_to_vmem [thread:$0]  %s605_s2, 3072, %s37_s9, [#allocation6], %s511_s0, %s511_s0, %s512_s15  }
  0x33   :  { %502 = dma.done.wait [#allocation3], 128  }
  0x34   :  { %503 = vsyncadd [#allocation3], 4294967168 }
  0x35   :  { %504 = dma.done.wait [#allocation6], 3200  }
  0x36   :  { %505 = vsyncadd [#allocation6], 4294964096  ;;  %v513_v0 = vmov 0   ;;  %v581_v1 = vld [vmem:[#allocation5] sm:$0xff]  ;;  %v52_v2 = vld [vmem:[#allocation2] sm:$0xff]  ;;  %v514_v3 = vmov 1   ;;  %v54_v54 = vlaneseq }
  0x37   :  { %402 = vset.pattern.permute.xlu1 %v513_v0  ;;  %400 = vset.pattern.permute.xlu0 %v513_v0  ;;  %v515_v4 = vmov 2   ;;  %v516_v5 = vmov 3   ;;  %v517_v6 = vmov 4   ;;  %v518_v7 = vmov 5   ;;  %v138_v9 = vld [vmem:[#allocation7 + $0x8] sm:$0xff]  ;;  %v141_v10 = vld [vmem:[#allocation7 + $0x20] sm:$0xff] }
  0x38   :  { %62 = vperm.xlu1 %402, %v581_v1   ;;  %57 = vperm.xlu0 %400, %v52_v2   ;;  %v519_v8 = vmov 7   ;;  %v355_v11 = vpack.c.bf16 %v141_v10, %v138_v9  ;;  %v137_v12 = vld [vmem:[#allocation7] sm:$0xff]  ;;  %v140_v13 = vld [vmem:[#allocation7 + $0x18] sm:$0xff]  ;;  %v139_v14 = vld [vmem:[#allocation7 + $0x10] sm:$0xff]  ;;  %v520_v17 = vmov 0.0|0.0   ;;  %v521_v25 = vmov 6  }
  0x39   :  { %v357_v15 = vpack.c.bf16 %v140_v13, %v137_v12  ;;  %v142_v16 = vld [vmem:[#allocation7 + $0x28] sm:$0xff]  ;;  %371 = vmatprep.subr.bf16.mxu1 %v520_v17  ;;  %v144_v19 = vld [vmem:[#allocation7 + $0x38] sm:$0xff]  ;;  %v147_v20 = vld [vmem:[#allocation7 + $0x50] sm:$0xff]  ;;  %v522_v47 = vmov 0.0   ;;  %vm523_vm0 = vmmov 0   ;;  %v55_v57 = vand.u32 127, %v54_v54 }
  0x3a   :  { %356 = vmatprep.subr.bf16.mxu0 %v355_v11  ;;  %v372_v18 = vpack.c.bf16 %v142_v16, %v139_v14  ;;  %v359_v21 = vpack.c.bf16 %v147_v20, %v144_v19  ;;  %v143_v22 = vld [vmem:[#allocation7 + $0x30] sm:$0xff]  ;;  %v146_v23 = vld [vmem:[#allocation7 + $0x48] sm:$0xff]  ;;  %v145_v24 = vld [vmem:[#allocation7 + $0x40] sm:$0xff]  ;;  %229 = vmatprep.mubr.f32.mxu0 %v522_v47  ;;  %vm161_vm9 = vcmask 523264   ;;  %s524_s2 = smov [#allocation8]  }
  0x3b   :  { %358 = vmatpush1.bf16.msra.mxu0 %v357_v15  ;;  %v361_v26 = vpack.c.bf16 %v146_v23, %v143_v22  ;;  %v148_v27 = vld [vmem:[#allocation7 + $0x58] sm:$0xff]  ;;  %v150_v29 = vld [vmem:[#allocation7 + $0x68] sm:$0xff]  ;;  %v153_v30 = vld [vmem:[#allocation7 + $0x80] sm:$0xff]  ;;  %352 = vmatprep.mubr.msk.f32.mxu1 %vm523_vm0, %v522_v47  ;;  %s315_s21 = sshll.u32 %s524_s2, 4  ;;  %s316_s21 = int_to_ptr.vmem [resolvable:$true] %s315_s21 }
  0x3c   :  { %403 = vset.pattern.permute.xlu1 %v514_v3  ;;  %401 = vset.pattern.permute.xlu0 %v514_v3  ;;  %v375_v28 = vpack.c.bf16 %v148_v27, %v145_v24  ;;  %v363_v31 = vpack.c.bf16 %v153_v30, %v150_v29  ;;  %v149_v32 = vld [vmem:[#allocation7 + $0x60] sm:$0xff]  ;;  %v152_v33 = vld [vmem:[#allocation7 + $0x78] sm:$0xff]  ;;  %v151_v34 = vld [vmem:[#allocation7 + $0x70] sm:$0xff]  ;;  %s480_s22 = scalar_lea.vmem %s316_s21, 384  ;;  %p485_p11 = scmp.lt.s32.totalorder %s316_s21, %s316_s21 }
  0x3d   :  { %72 = vperm.xlu1 %403, %v581_v1   ;;  %68 = vperm.xlu0 %401, %v52_v2   ;;  %v365_v35 = vpack.c.bf16 %v152_v33, %v149_v32  ;;  %v154_v36 = vld [vmem:[#allocation7 + $0x88] sm:$0xff]  ;;  %v156_v38 = vld [vmem:[#allocation7 + $0x98] sm:$0xff]  ;;  %v159_v39 = vld [vmem:[#allocation7 + $0xb0] sm:$0xff]  ;;  %p481_p10 = scmp.ne.s32.totalorder %s316_s21, %s480_s22  ;;  %p486_p12 = scmp.lt.s32.totalorder %s480_s22, %s480_s22 }
  0x3e   :  { %373 = vmatpush3.bf16.msra.mxu1 %v372_v18  ;;  %360 = vmatprep.subr.bf16.mxu0 %v359_v21  ;;  %v378_v37 = vpack.c.bf16 %v154_v36, %v151_v34  ;;  %v367_v40 = vpack.c.bf16 %v159_v39, %v156_v38  ;;  %v155_v41 = vld [vmem:[#allocation7 + $0x90] sm:$0xff]  ;;  %v158_v42 = vld [vmem:[#allocation7 + $0xa8] sm:$0xff]  ;;  %v157_v43 = vld [vmem:[#allocation7 + $0xa0] sm:$0xff] }
  0x3f   :  { %374 = vmatprep.subr.bf16.mxu1 %v520_v17  ;;  %362 = vmatpush1.bf16.msra.mxu0 %v361_v26  ;;  %v369_v44 = vpack.c.bf16 %v158_v42, %v155_v41  ;;  %v160_v45 = vld [vmem:[#allocation7 + $0xb8] sm:$0xff]  ;;  %p487_p13 = por %p486_p12, %p485_p11 }
  0x40   :  { %364 = vmatprep.subr.bf16.mxu0 %v363_v31  ;;  %v381_v46 = vpack.c.bf16 %v160_v45, %v157_v43 }
  0x41   :  { %404 = vset.pattern.permute.xlu1 %v515_v4  ;;  %405 = vset.pattern.permute.xlu0 %v515_v4  ;;  %p488_p0 = pnand %p487_p13, %p481_p10 }
  0x42   :  { %78 = vperm.xlu1 %404, %v52_v2   ;;  %82 = vperm.xlu0 %405, %v581_v1  }
  0x43   :  { %376 = vmatpush3.bf16.msra.mxu1 %v375_v28  ;;  %366 = vmatpush1.bf16.msra.mxu0 %v365_v35 }
  0x44   :  { %377 = vmatprep.subr.bf16.mxu1 %v520_v17  ;;  %368 = vmatprep.subr.bf16.mxu0 %v367_v40 }
  0x46   :  { %406 = vset.pattern.permute.xlu1 %v516_v5  ;;  %407 = vset.pattern.permute.xlu0 %v517_v6 }
  0x47   :  { %88 = vperm.xlu1 %406, %v52_v2   ;;  %98 = vperm.xlu0 %407, %v52_v2  }
  0x48   :  { %379 = vmatpush3.bf16.msra.mxu1 %v378_v37  ;;  %370 = vmatpush1.bf16.msra.mxu0 %v369_v44 }
  0x49   :  { %380 = vmatprep.subr.bf16.mxu1 %v520_v17 }
  0x4b   :  { %92 = vperm.xlu1 %406, %v581_v1   ;;  %410 = vset.pattern.permute.xlu0 %v518_v7 }
  0x4c   :  { %112 = vperm.xlu0 %410, %v581_v1   ;;  %382 = vmatpush3.bf16.msra.mxu1 %v381_v46 }
  0x4f   :  { %408 = vset.pattern.permute.xlu1 %v517_v6 }
  0x50   :  { %102 = vperm.xlu1 %408, %v581_v1   ;;  %412 = vset.pattern.permute.xlu0 %v519_v8 }
  0x51   :  { %128 = vperm.xlu0 %412, %v52_v2  }
  0x54   :  { %409 = vset.pattern.permute.xlu1 %v518_v7 }
  0x55   :  { %108 = vperm.xlu1 %409, %v52_v2  }
  0x59   :  { %411 = vset.pattern.permute.xlu1 %v521_v25 }
  0x5a   :  { %118 = vperm.xlu1 %411, %v52_v2  }
  0x5e   :  { %122 = vperm.xlu1 %411, %v581_v1  }
  0x62   :  { %413 = vset.pattern.permute.xlu1 %v519_v8 }
  0x63   :  { %132 = vperm.xlu1 %413, %v581_v1  }
  0xb7   :  { %v63_v48 = vpop.permute.xlu1 %62  ;;  %v58_v52 = vpop.permute.xlu0 %57 }
  0xb8   :  { %vm59_vm2 = vcmp.eq.s32.totalorder %v58_v52, %v55_v57 }
  0xb9   :  { %v65_v62 = vsel %vm59_vm2, %v63_v48, 0.0 }
  0xbc   :  { %v73_v49 = vpop.permute.xlu1 %72  ;;  %v69_v55 = vpop.permute.xlu0 %68 }
  0xbd   :  { %vm70_vm1 = vcmp.eq.s32.totalorder %v69_v55, %v55_v57 }
  0xbe   :  { %v75_v60 = vsel %vm70_vm1, %v73_v49, 0.0 }
  0xbf   :  { %v76_v0 = vadd.f32 %v75_v60, %v65_v62 }
  0xc1   :  { %v79_v50 = vpop.permute.xlu1 %78  ;;  %v83_v58 = vpop.permute.xlu0 %82 }
  0xc2   :  { %vm80_vm3 = vcmp.eq.s32.totalorder %v79_v50, %v55_v57 }
  0xc3   :  { %v85_v63 = vsel %vm80_vm3, %v83_v58, 0.0 }
  0xc4   :  { %v86_v4 = vadd.f32 %v85_v63, %v76_v0 }
  0xc6   :  { %v89_v51 = vpop.permute.xlu1 %88  ;;  %v99_v61 = vpop.permute.xlu0 %98 }
  0xc7   :  { %vm90_vm4 = vcmp.eq.s32.totalorder %v89_v51, %v55_v57  ;;  %vm100_vm5 = vcmp.eq.s32.totalorder %v99_v61, %v55_v57 }
  0xca   :  { %v93_v53 = vpop.permute.xlu1 %92 }
  0xcb   :  { %v95_v1 = vsel %vm90_vm4, %v93_v53, 0.0  ;;  %v113_v2 = vpop.permute.xlu0 %112 }
  0xcc   :  { %v96_v6 = vadd.f32 %v95_v1, %v86_v4 }
  0xcf   :  { %v103_v56 = vpop.permute.xlu1 %102 }
  0xd0   :  { %v105_v5 = vsel %vm100_vm5, %v103_v56, 0.0  ;;  %v129_v9 = vpop.permute.xlu0 %128 }
  0xd1   :  { %v106_v10 = vadd.f32 %v105_v5, %v96_v6  ;;  %vm130_vm8 = vcmp.eq.s32.totalorder %v129_v9, %v55_v57 }
  0xd4   :  { %v109_v59 = vpop.permute.xlu1 %108 }
  0xd5   :  { %vm110_vm6 = vcmp.eq.s32.totalorder %v109_v59, %v55_v57 }
  0xd6   :  { %v115_v7 = vsel %vm110_vm6, %v113_v2, 0.0 }
  0xd7   :  { %v116_v12 = vadd.f32 %v115_v7, %v106_v10 }
  0xd9   :  { %v119_v3 = vpop.permute.xlu1 %118 }
  0xda   :  { %vm120_vm7 = vcmp.eq.s32.totalorder %v119_v3, %v55_v57 }
  0xdd   :  { %v123_v8 = vpop.permute.xlu1 %122 }
  0xde   :  { %v125_v11 = vsel %vm120_vm7, %v123_v8, 0.0 }
  0xdf   :  { %v126_v13 = vadd.f32 %v125_v11, %v116_v12 }
  0xe2   :  { %v133_v14 = vpop.permute.xlu1 %132 }
  0xe3   :  { %v135_v15 = vsel %vm130_vm8, %v133_v14, 0.0 }
  0xe4   :  { %v136_v16 = vadd.f32 %v135_v15, %v126_v13 }
  0xe6   :  { %325 = vmatmul.mubr.msk.f32.vlgmr.msra.gmra.mrb[0].mxu0 %vm161_vm9, %v136_v16  ;;  %353 = vmatmul.mubr.msk.f32.vlgmr.msra.gmra.mrb[0].mxu1 %vm161_vm9, %v136_v16 }
 0x1b9   :  { %v231_v17 = vpop.f32.mrb[0].mxu0  ;;  %v302_v18 = vpop.f32.mrb[0].mxu1 }
 0x1ba   :  { %306 = vst [vmem:[#allocation8] sm:$0xff] %v231_v17  ;;  %308 = vst [vmem:[#allocation8 + $0x10] sm:$0xff] %v302_v18  ;;  %v233_v19 = vpop.f32.mrb[1].mxu0  ;;  %v354_v20 = vpop.f32.mrb[1].mxu1 }
 0x1bb   :  { %307 = vst [vmem:[#allocation8 + $0x8] sm:$0xff] %v233_v19 }
 0x1bc   :  { %491 = shalt.err (!%p488_p0)
}
 0x1bd   :  { %s492_s25 = scalar_lea.hbm %s606_s3, 384 }
 0x1be   :  { %p493_p1 = scmp.ne.s32.totalorder %s606_s3, %s492_s25  ;;  %p496_p2 = scmp.lt.u32.totalorder %s492_s25, %s606_s3 }
 0x1c0   :  { %p498_p3 = pnand %p496_p2, %p493_p1 }
 0x1c2   :  { %501 = shalt.err (!%p498_p3)
}
 0x1c3   :  { %318 = dma.vmem_to_hbm [thread:$0]  %s316_s21, 384, %s606_s3, [#allocation4]  }
 0x1c4   :  { %506 = dma.done.wait [#allocation4], 384  }
 0x1c5   :  { %507 = vsyncadd [#allocation4], 4294966912 }
 0x1c6   :  { %322 = vsyncpa [#allocation3], 1 }
 0x1c7   :  { %323 = vsyncpa [#allocation6], 1 }
 0x1c8   :  { %324 = vsyncpa [#allocation4], 1 }

</bundles_post_ra>
